<compile_context>
chip_gen: v7x
topology: tpu7x:2x2x1
jax: 0.10.0
libtpu: 0.0.40
codegen_flags: <defaults>
</compile_context>

<pallas_src>
import functools

import numpy as np
import jax
import jax.numpy as jnp
from jax.experimental import pallas as pl
from jax.experimental.pallas import tpu as pltpu


MOORE_KERNEL = np.array(
    [[1.0, 1.0, 1.0],
     [1.0, 10.0, 1.0],
     [1.0, 1.0, 1.0]], dtype=np.float32)


def make_automata_weights(channels: int) -> np.ndarray:
    """Conv2d weight from AutomataIter.__init__: (C_out, C_in, 3, 3); every
    (oc, ic) pair gets the Moore kernel.  torch stores fp16, but 1.0 / 10.0
    are exact in any float dtype, so float32 is bit-identical."""
    return np.ascontiguousarray(
        np.broadcast_to(MOORE_KERNEL, (channels, channels, 3, 3)),
        dtype=np.float32)


def _automata_kernel(x_ref, o_ref, *, iters, C, H, W, ring_w, center_w):
    """One batch slab.  x_ref / o_ref: (Bt, C, H*W), H*W on the lane axis.

    Fast path (valid because all (oc, ic) pairs share one 3x3 kernel, asserted
    in the wrapper): score[oc] = conv3x3(sum_ic cur[ic]) is the same for every
    oc, so a single (Bt, H*W) plane carries the full state.  After iteration 1
    all channels are equal, so later channel sums are just C * plane (folded
    into the weights).  The shared kernel is ring-uniform, so
        conv = ring_w * box3x3(x) + (center_w - ring_w) * x
    and box3x3 separates into a row-sum followed by a column-sum.
    """
    HW = H * W
    Bt = x_ref.shape[0]

    x = x_ref[...].astype(jnp.float32)              # (Bt, C, HW)
    plane = jnp.sum(x, axis=1)                      # (Bt, HW) channel sum

    # Column masks for the W-direction wrap fix-up of the flattened layout
    # (hoisted out of the iteration loop; bool masks stay cheap).
    col = jax.lax.broadcasted_iota(jnp.int32, (Bt, HW), 1) % W
    first_col = col == 0
    last_col = col == (W - 1)

    def step(cur, rw, cw):
        # H-direction neighbours: on the flattened row-major (H*W) axis a
        # circular shift by one image row is exactly a lane roll by +-W.
        up = pltpu.roll(cur, W, axis=1)              # cur[(h-1) % H, w]
        dn = pltpu.roll(cur, HW - W, axis=1)         # cur[(h+1) % H, w]
        rows = cur + up + dn
        # W-direction neighbours: lane roll by +-1, fixed up at row boundaries.
        west = jnp.where(first_col,
                         pltpu.roll(rows, HW - W + 1, axis=1),  # rows[h, W-1]
                         pltpu.roll(rows, 1, axis=1))           # rows[h, w-1]
        east = jnp.where(last_col,
                         pltpu.roll(rows, W - 1, axis=1),       # rows[h, 0]
                         pltpu.roll(rows, HW - 1, axis=1))      # rows[h, w+1]
        box = rows + west + east
        score = box if rw == 1.0 else rw * box
        score = score + (cw - rw) * cur
        # AutomataIter.set_cell_status; negation folded into the first factor,
        # balanced product tree to keep dependency depth minimal.
        p01 = (1.5 - score) * (score - 6.5)
        p23 = (score - 11.5) * (score - 14.5)
        return jnp.clip(p01 * p23, 0.0, 1.0)

    plane = step(plane, ring_w, center_w)            # iteration 1 (channel sum)

    rest = iters - 1
    rw2, cw2 = ring_w * C, center_w * C              # later iters: sum_ic = C*plane
    if rest > 0:
        if rest <= 16:                               # short: full unroll (LLO visibility)
            for _ in range(rest):
                plane = step(plane, rw2, cw2)
        else:                                        # long: bounded live ranges, amortized
            plane = jax.lax.fori_loop(               #       loop overhead via unroll
                0, rest, lambda _, p: step(p, rw2, cw2), plane, unroll=4)

    # All output channels are identical -> one unmasked lane-dense full-tile
    # store instead of C sublane-masked stores.
    o_ref[...] = jnp.broadcast_to(
        plane.astype(o_ref.dtype)[:, None, :], o_ref.shape)


def automata_block(x: jax.Array, *, iters: int, weight: np.ndarray) -> jax.Array:
    B, C, H, W = x.shape
    w = np.asarray(weight, dtype=np.float32)
    assert w.shape == (C, C, 3, 3)
    base = w[0, 0]
    # Fast-path preconditions (always true for AutomataIter's Moore kernel).
    assert np.all(w == base), (
        "channel-sum fast path needs an identical 3x3 kernel for every (oc, ic)")
    ring = np.array([base[0, 0], base[0, 1], base[0, 2], base[1, 0],
                     base[1, 2], base[2, 0], base[2, 1], base[2, 2]])
    assert np.all(ring == ring[0]), "separable fast path needs uniform ring weights"
    ring_w = float(ring[0])
    center_w = float(base[1, 1])

    if iters <= 0:
        return x

    HW = H * W
    xr = x.reshape(B, C, HW)        # lane-dense spatial layout (last dim = H*W)

    # Slab selection (perf feedback): keep the whole batch in ONE block unless
    # each half-slab still fills >= 8 sublanes.  On single-TC v5e/v6e a split
    # is a pure serial grid step and halves vreg sublane occupancy; it only
    # pays on 2-TC v7x with a big enough batch.  (Sharding the two slabs onto
    # v7x's two TensorCores properly would use pltpu.CORE_PARALLEL; plain
    # PARALLEL is used here so the kernel stays valid on every generation.)
    nb = 2 if (B % 2 == 0 and (B // 2) >= 8) else 1
    Bt = B // nb

    kernel = functools.partial(
        _automata_kernel, iters=iters, C=C, H=H, W=W,
        ring_w=ring_w, center_w=center_w)

    out = pl.pallas_call(
        kernel,
        out_shape=jax.ShapeDtypeStruct((B, C, HW), x.dtype),
        grid_spec=pltpu.PrefetchScalarGridSpec(
            num_scalar_prefetch=0,
            grid=(nb,),
            in_specs=[pl.BlockSpec((Bt, C, HW), lambda b: (b, 0, 0))],
            out_specs=pl.BlockSpec((Bt, C, HW), lambda b: (b, 0, 0)),
        ),
        compiler_params=pltpu.CompilerParams(
            dimension_semantics=(
                pltpu.PARALLEL if nb > 1 else pltpu.ARBITRARY,)),
    )(xr)
    return out.reshape(B, C, H, W)


def automata_block_reference(x: jax.Array, *, iters: int, weight: np.ndarray) -> jax.Array:
    """Plain-JAX reference of the PyTorch forward (circular conv + polynomial)."""
    w = jnp.asarray(weight, jnp.float32)
    cur = x.astype(jnp.float32)
    for _ in range(iters):
        score = jnp.zeros_like(cur)
        for ky in range(3):
            for kx in range(3):
                shifted = jnp.roll(jnp.roll(cur, 1 - ky, axis=2), 1 - kx, axis=3)
                score = score + jnp.einsum('oi,bihw->bohw', w[:, :, ky, kx], shifted)
        scaled = -(score - 1.5) * (score - 6.5) * (score - 11.5) * (score - 14.5)
        cur = jnp.clip(scaled, 0.0, 1.0)
    return cur.astype(x.dtype)


if __name__ == "__main__":
    B, C, H, W = 2, 2, 16, 16       # AutomataBlock default channels=2
    ITERS = 3

    key = jax.random.PRNGKey(0)
    # Cellular-automaton style binary cells in {0, 1}.
    x = jax.random.bernoulli(key, 0.5, (B, C, H, W)).astype(jnp.float32)

    weight = make_automata_weights(C)

    out = jax.block_until_ready(automata_block(x, iters=ITERS, weight=weight))
    ref = jax.block_until_ready(
        automata_block_reference(x, iters=ITERS, weight=weight))

    np.testing.assert_allclose(np.asarray(out), np.asarray(ref),
                               rtol=1e-5, atol=1e-5)
    print("KERNEL_OK")
</pallas_src>

<mosaic_0001>
module attributes {stable_mosaic.version = 11 : i64} {
  func.func @_automata_kernel(%arg0: i32, %arg1: memref<2x2x256xf32, #tpu.memory_space<vmem>>, %arg2: memref<2x2x256xf32, #tpu.memory_space<vmem>>) attributes {dimension_semantics = [#tpu.dimension_semantics<arbitrary>], iteration_bounds = array<i64: 1>, scalar_prefetch = 0 : i64, scratch_operands = 0 : i64, tpu.core_type = #tpu.core_type<tc>, window_params = [{transform_indices = @transform_0, window_bounds = array<i64: 2, 2, 256>}, {transform_indices = @transform_1, window_bounds = array<i64: 2, 2, 256>}]} {
    %c0 = arith.constant 0 : index
    %c0_0 = arith.constant 0 : index
    %c0_1 = arith.constant 0 : index
    %0 = vector.load %arg1[%c0, %c0_0, %c0_1] : memref<2x2x256xf32, #tpu.memory_space<vmem>>, vector<2x2x256xf32>
    %cst = arith.constant dense<0.000000e+00> : vector<2x256xf32>
    %1 = vector.multi_reduction <add>, %0, %cst [1] : vector<2x2x256xf32> to vector<2x256xf32>
    %2 = tpu.iota {dimensions = array<i32: 1>} : vector<2x256xi32>
    %c16_i32 = arith.constant 16 : i32
    %c0_i32 = arith.constant 0 : i32
    %3 = arith.cmpi eq, %c16_i32, %c0_i32 : i32
    %c1_i32 = arith.constant 1 : i32
    %4 = arith.select %3, %c1_i32, %c16_i32 : i32
    %5 = vector.broadcast %4 : i32 to vector<2x256xi32>
    %6 = arith.remsi %2, %5 : vector<2x256xi32>
    %c0_i32_2 = arith.constant 0 : i32
    %7 = vector.broadcast %c0_i32_2 : i32 to vector<2x256xi32>
    %8 = arith.cmpi ne, %6, %7 : vector<2x256xi32>
    %c0_i32_3 = arith.constant 0 : i32
    %9 = vector.broadcast %c0_i32_3 : i32 to vector<2x256xi32>
    %10 = arith.cmpi slt, %6, %9 : vector<2x256xi32>
    %c0_i32_4 = arith.constant 0 : i32
    %11 = arith.cmpi slt, %4, %c0_i32_4 : i32
    %12 = vector.broadcast %11 : i1 to vector<2x256xi1>
    %13 = vector.broadcast %12 : vector<2x256xi1> to vector<2x256xi1>
    %14 = arith.xori %10, %13 : vector<2x256xi1>
    %15 = arith.andi %14, %8 : vector<2x256xi1>
    %16 = vector.broadcast %4 : i32 to vector<2x256xi32>
    %17 = arith.addi %6, %16 : vector<2x256xi32>
    %18 = arith.select %15, %17, %6 : vector<2x256xi1>, vector<2x256xi32>
    %c0_i32_5 = arith.constant 0 : i32
    %19 = vector.broadcast %c0_i32_5 : i32 to vector<2x256xi32>
    %20 = arith.cmpi eq, %18, %19 : vector<2x256xi32>
    %c15_i32 = arith.constant 15 : i32
    %21 = vector.broadcast %c15_i32 : i32 to vector<2x256xi32>
    %22 = arith.cmpi eq, %18, %21 : vector<2x256xi32>
    %c16_i32_6 = arith.constant 16 : i32
    %23 = tpu.dynamic_rotate %1 by %c16_i32_6 dim 1 : vector<2x256xf32>, i32 -> vector<2x256xf32>
    %c240_i32 = arith.constant 240 : i32
    %24 = tpu.dynamic_rotate %1 by %c240_i32 dim 1 : vector<2x256xf32>, i32 -> vector<2x256xf32>
    %25 = arith.addf %1, %23 : vector<2x256xf32>
    %26 = arith.addf %25, %24 : vector<2x256xf32>
    %c241_i32 = arith.constant 241 : i32
    %27 = tpu.dynamic_rotate %26 by %c241_i32 dim 1 : vector<2x256xf32>, i32 -> vector<2x256xf32>
    %c1_i32_7 = arith.constant 1 : i32
    %28 = tpu.dynamic_rotate %26 by %c1_i32_7 dim 1 : vector<2x256xf32>, i32 -> vector<2x256xf32>
    %29 = arith.select %20, %27, %28 : vector<2x256xi1>, vector<2x256xf32>
    %c15_i32_8 = arith.constant 15 : i32
    %30 = tpu.dynamic_rotate %26 by %c15_i32_8 dim 1 : vector<2x256xf32>, i32 -> vector<2x256xf32>
    %c255_i32 = arith.constant 255 : i32
    %31 = tpu.dynamic_rotate %26 by %c255_i32 dim 1 : vector<2x256xf32>, i32 -> vector<2x256xf32>
    %32 = arith.select %22, %30, %31 : vector<2x256xi1>, vector<2x256xf32>
    %33 = arith.addf %26, %29 : vector<2x256xf32>
    %34 = arith.addf %33, %32 : vector<2x256xf32>
    %cst_9 = arith.constant 9.000000e+00 : f32
    %35 = vector.broadcast %cst_9 : f32 to vector<2x256xf32>
    %36 = arith.mulf %35, %1 : vector<2x256xf32>
    %37 = arith.addf %34, %36 : vector<2x256xf32>
    %cst_10 = arith.constant 1.500000e+00 : f32
    %38 = vector.broadcast %cst_10 : f32 to vector<2x256xf32>
    %39 = arith.subf %38, %37 : vector<2x256xf32>
    %cst_11 = arith.constant 6.500000e+00 : f32
    %40 = vector.broadcast %cst_11 : f32 to vector<2x256xf32>
    %41 = arith.subf %37, %40 : vector<2x256xf32>
    %42 = arith.mulf %39, %41 : vector<2x256xf32>
    %cst_12 = arith.constant 1.150000e+01 : f32
    %43 = vector.broadcast %cst_12 : f32 to vector<2x256xf32>
    %44 = arith.subf %37, %43 : vector<2x256xf32>
    %cst_13 = arith.constant 1.450000e+01 : f32
    %45 = vector.broadcast %cst_13 : f32 to vector<2x256xf32>
    %46 = arith.subf %37, %45 : vector<2x256xf32>
    %47 = arith.mulf %44, %46 : vector<2x256xf32>
    %48 = arith.mulf %42, %47 : vector<2x256xf32>
    %cst_14 = arith.constant 0.000000e+00 : f32
    %cst_15 = arith.constant 1.000000e+00 : f32
    %49 = vector.broadcast %cst_14 : f32 to vector<2x256xf32>
    %50 = arith.maximumf %49, %48 : vector<2x256xf32>
    %51 = vector.broadcast %cst_15 : f32 to vector<2x256xf32>
    %52 = arith.minimumf %51, %50 : vector<2x256xf32>
    %c16_i32_16 = arith.constant 16 : i32
    %53 = tpu.dynamic_rotate %52 by %c16_i32_16 dim 1 : vector<2x256xf32>, i32 -> vector<2x256xf32>
    %c240_i32_17 = arith.constant 240 : i32
    %54 = tpu.dynamic_rotate %52 by %c240_i32_17 dim 1 : vector<2x256xf32>, i32 -> vector<2x256xf32>
    %55 = arith.addf %52, %53 : vector<2x256xf32>
    %56 = arith.addf %55, %54 : vector<2x256xf32>
    %c241_i32_18 = arith.constant 241 : i32
    %57 = tpu.dynamic_rotate %56 by %c241_i32_18 dim 1 : vector<2x256xf32>, i32 -> vector<2x256xf32>
    %c1_i32_19 = arith.constant 1 : i32
    %58 = tpu.dynamic_rotate %56 by %c1_i32_19 dim 1 : vector<2x256xf32>, i32 -> vector<2x256xf32>
    %59 = arith.select %20, %57, %58 : vector<2x256xi1>, vector<2x256xf32>
    %c15_i32_20 = arith.constant 15 : i32
    %60 = tpu.dynamic_rotate %56 by %c15_i32_20 dim 1 : vector<2x256xf32>, i32 -> vector<2x256xf32>
    %c255_i32_21 = arith.constant 255 : i32
    %61 = tpu.dynamic_rotate %56 by %c255_i32_21 dim 1 : vector<2x256xf32>, i32 -> vector<2x256xf32>
    %62 = arith.select %22, %60, %61 : vector<2x256xi1>, vector<2x256xf32>
    %63 = arith.addf %56, %59 : vector<2x256xf32>
    %64 = arith.addf %63, %62 : vector<2x256xf32>
    %cst_22 = arith.constant 2.000000e+00 : f32
    %65 = vector.broadcast %cst_22 : f32 to vector<2x256xf32>
    %66 = arith.mulf %65, %64 : vector<2x256xf32>
    %cst_23 = arith.constant 1.800000e+01 : f32
    %67 = vector.broadcast %cst_23 : f32 to vector<2x256xf32>
    %68 = arith.mulf %67, %52 : vector<2x256xf32>
    %69 = arith.addf %66, %68 : vector<2x256xf32>
    %cst_24 = arith.constant 1.500000e+00 : f32
    %70 = vector.broadcast %cst_24 : f32 to vector<2x256xf32>
    %71 = arith.subf %70, %69 : vector<2x256xf32>
    %cst_25 = arith.constant 6.500000e+00 : f32
    %72 = vector.broadcast %cst_25 : f32 to vector<2x256xf32>
    %73 = arith.subf %69, %72 : vector<2x256xf32>
    %74 = arith.mulf %71, %73 : vector<2x256xf32>
    %cst_26 = arith.constant 1.150000e+01 : f32
    %75 = vector.broadcast %cst_26 : f32 to vector<2x256xf32>
    %76 = arith.subf %69, %75 : vector<2x256xf32>
    %cst_27 = arith.constant 1.450000e+01 : f32
    %77 = vector.broadcast %cst_27 : f32 to vector<2x256xf32>
    %78 = arith.subf %69, %77 : vector<2x256xf32>
    %79 = arith.mulf %76, %78 : vector<2x256xf32>
    %80 = arith.mulf %74, %79 : vector<2x256xf32>
    %cst_28 = arith.constant 0.000000e+00 : f32
    %cst_29 = arith.constant 1.000000e+00 : f32
    %81 = vector.broadcast %cst_28 : f32 to vector<2x256xf32>
    %82 = arith.maximumf %81, %80 : vector<2x256xf32>
    %83 = vector.broadcast %cst_29 : f32 to vector<2x256xf32>
    %84 = arith.minimumf %83, %82 : vector<2x256xf32>
    %c16_i32_30 = arith.constant 16 : i32
    %85 = tpu.dynamic_rotate %84 by %c16_i32_30 dim 1 : vector<2x256xf32>, i32 -> vector<2x256xf32>
    %c240_i32_31 = arith.constant 240 : i32
    %86 = tpu.dynamic_rotate %84 by %c240_i32_31 dim 1 : vector<2x256xf32>, i32 -> vector<2x256xf32>
    %87 = arith.addf %84, %85 : vector<2x256xf32>
    %88 = arith.addf %87, %86 : vector<2x256xf32>
    %c241_i32_32 = arith.constant 241 : i32
    %89 = tpu.dynamic_rotate %88 by %c241_i32_32 dim 1 : vector<2x256xf32>, i32 -> vector<2x256xf32>
    %c1_i32_33 = arith.constant 1 : i32
    %90 = tpu.dynamic_rotate %88 by %c1_i32_33 dim 1 : vector<2x256xf32>, i32 -> vector<2x256xf32>
    %91 = arith.select %20, %89, %90 : vector<2x256xi1>, vector<2x256xf32>
    %c15_i32_34 = arith.constant 15 : i32
    %92 = tpu.dynamic_rotate %88 by %c15_i32_34 dim 1 : vector<2x256xf32>, i32 -> vector<2x256xf32>
    %c255_i32_35 = arith.constant 255 : i32
    %93 = tpu.dynamic_rotate %88 by %c255_i32_35 dim 1 : vector<2x256xf32>, i32 -> vector<2x256xf32>
    %94 = arith.select %22, %92, %93 : vector<2x256xi1>, vector<2x256xf32>
    %95 = arith.addf %88, %91 : vector<2x256xf32>
    %96 = arith.addf %95, %94 : vector<2x256xf32>
    %cst_36 = arith.constant 2.000000e+00 : f32
    %97 = vector.broadcast %cst_36 : f32 to vector<2x256xf32>
    %98 = arith.mulf %97, %96 : vector<2x256xf32>
    %cst_37 = arith.constant 1.800000e+01 : f32
    %99 = vector.broadcast %cst_37 : f32 to vector<2x256xf32>
    %100 = arith.mulf %99, %84 : vector<2x256xf32>
    %101 = arith.addf %98, %100 : vector<2x256xf32>
    %cst_38 = arith.constant 1.500000e+00 : f32
    %102 = vector.broadcast %cst_38 : f32 to vector<2x256xf32>
    %103 = arith.subf %102, %101 : vector<2x256xf32>
    %cst_39 = arith.constant 6.500000e+00 : f32
    %104 = vector.broadcast %cst_39 : f32 to vector<2x256xf32>
    %105 = arith.subf %101, %104 : vector<2x256xf32>
    %106 = arith.mulf %103, %105 : vector<2x256xf32>
    %cst_40 = arith.constant 1.150000e+01 : f32
    %107 = vector.broadcast %cst_40 : f32 to vector<2x256xf32>
    %108 = arith.subf %101, %107 : vector<2x256xf32>
    %cst_41 = arith.constant 1.450000e+01 : f32
    %109 = vector.broadcast %cst_41 : f32 to vector<2x256xf32>
    %110 = arith.subf %101, %109 : vector<2x256xf32>
    %111 = arith.mulf %108, %110 : vector<2x256xf32>
    %112 = arith.mulf %106, %111 : vector<2x256xf32>
    %cst_42 = arith.constant 0.000000e+00 : f32
    %cst_43 = arith.constant 1.000000e+00 : f32
    %113 = vector.broadcast %cst_42 : f32 to vector<2x256xf32>
    %114 = arith.maximumf %113, %112 : vector<2x256xf32>
    %115 = vector.broadcast %cst_43 : f32 to vector<2x256xf32>
    %116 = arith.minimumf %115, %114 : vector<2x256xf32>
    %117 = vector.shape_cast %116 : vector<2x256xf32> to vector<2x1x256xf32>
    %118 = vector.shape_cast %117 : vector<2x1x256xf32> to vector<2x1x256xf32>
    %119 = vector.broadcast %118 : vector<2x1x256xf32> to vector<2x2x256xf32>
    %c0_44 = arith.constant 0 : index
    %c0_45 = arith.constant 0 : index
    %c0_46 = arith.constant 0 : index
    %120 = vector.load %arg2[%c0_44, %c0_45, %c0_46] : memref<2x2x256xf32, #tpu.memory_space<vmem>>, vector<2x2x256xf32>
    tpu.vector_store %arg2[%c0_44, %c0_45, %c0_46], %119 {strides = array<i32>} : memref<2x2x256xf32, #tpu.memory_space<vmem>>, vector<2x2x256xf32>,
    return
  }
  func.func @transform_0(%arg0: i32) -> (i32, i32, i32) {
    %c0_i32 = arith.constant 0 : i32
    %c0_i32_0 = arith.constant 0 : i32
    %c0_i32_1 = arith.constant 0 : i32
    return %arg0, %c0_i32, %c0_i32_0 : i32, i32, i32
  }
  func.func @transform_1(%arg0: i32) -> (i32, i32, i32) {
    %c0_i32 = arith.constant 0 : i32
    %c0_i32_0 = arith.constant 0 : i32
    %c0_i32_1 = arith.constant 0 : i32
    return %arg0, %c0_i32, %c0_i32_0 : i32, i32, i32
  }
}

</mosaic_0001>

<bundles_post_ra>
// kernel: tpu_custom_call.1
= control target key start
LH: loop header
LB: loop body
LE: loop exit
PB: predicated region body
PF: predicated region fallthrough
CT: control target
= control target key end

     0   :  { %6 = vsyncpa [#allocation3], 0  ;;  %s1013_s0 = inlined_call_operand.hbm [shape: f32[2,2,256], index: 0, kind: input, shape index: {}]   ;;  %s1014_s1 = inlined_call_operand.hbm [shape: f32[2,2,256], index: 1, kind: output, shape index: {}]  }
   0x1   :  { %7 = vsyncpa [#allocation4], 0  ;;  %s731_s6 = smov [#allocation2]   ;;  %s683_s10 = scalar_lea.hbm %s1013_s0, 128 }
   0x2   :  { %s13_s7 = sshll.u32 %s731_s6, 4  ;;  %p684_p0 = scmp.ne.s32.totalorder %s1013_s0, %s683_s10  ;;  %s14_s7 = int_to_ptr.vmem [resolvable:$true] %s13_s7 }
   0x3   :  { %p687_p1 = scmp.lt.u32.totalorder %s683_s10, %s1013_s0 }
   0x5   :  { %p689_p2 = pnand %p687_p1, %p684_p0 }
   0x7   :  { %692 = shalt.err (!%p689_p2)
}
   0x8   :  { %s693_s15 = scalar_lea.vmem %s14_s7, 128  ;;  %p698_p4 = scmp.lt.s32.totalorder %s14_s7, %s14_s7 }
   0x9   :  { %p694_p3 = scmp.ne.s32.totalorder %s14_s7, %s693_s15  ;;  %p699_p5 = scmp.lt.s32.totalorder %s693_s15, %s693_s15 }
   0xb   :  { %p700_p6 = por %p699_p5, %p698_p4 }
   0xd   :  { %p701_p7 = pnand %p700_p6, %p694_p3 }
   0xf   :  { %704 = shalt.err (!%p701_p7)
}
  0x10   :  { %s732_s16 = smov 64   ;;  %s733_s17 = smov 4  }
  0x11   :  { %19 = dma.hbm_to_vmem [thread:$0]  %s1013_s0, 128, %s14_s7, [#allocation3], %s732_s16, %s732_s16, %s733_s17  }
  0x12   :  { %727 = dma.done.wait [#allocation3], 128  }
  0x13   :  { %728 = vsyncadd [#allocation3], 4294967168  ;;  %vm47_vm0 = vcmask 1041408   ;;  %vm111_vm1 = vcmask 1041409   ;;  %s734_s0 = smov 112   ;;  %s735_s20 = smov 16   ;;  %v76_v34 = vlaneseq }
  0x14   :  { %v633_v0 = vld.sshfl [vmem:[#allocation2] sm:$0x33 pattern:$0x76325410]  ;;  %s736_s21 = smov 113   ;;  %s737_s22 = smov 1  }
  0x15   :  { %v634_v1 = vld.sshfl [vmem:[#allocation2 + $0x4] sm:$0x33 pattern:$0x76325410]  ;;  %v48_v2 = vsel %vm47_vm0, %v633_v0, 0.0  ;;  %v34_v3 = vcombine.high %v633_v0, %v633_v0  ;;  %v785_v35 = vand.u32 127, %v76_v34 }
  0x16   :  { %v42_v4 = vcombine.high %v634_v1, %v634_v1  ;;  %v49_v5 = vrot.slane %v48_v2, 4  ;;  %v62_v6 = vsel %vm47_vm0, %v634_v1, 0.0  ;;  %s738_s23 = smov 15   ;;  %s739_s24 = smov 127  }
  0x17   :  { %v63_v7 = vrot.slane %v62_v6, 4  ;;  %v55_v8 = vsel %vm47_vm0, %v34_v3, 0.0  ;;  %vm127_vm2 = vcmp.lt.s32.totalorder %v785_v35, 112  ;;  %vm120_vm3 = vcmp.lt.s32.totalorder %v785_v35, 16  ;;  %s740_s25 = smov [#allocation5]  }
  0x18   :  { %v50_v9 = vadd.f32 %v49_v5, %v48_v2  ;;  %v56_v10 = vrot.slane %v55_v8, 4  ;;  %v69_v11 = vsel %vm47_vm0, %v42_v4, 0.0  ;;  %v78_v60 = vadd.s32 128, %v785_v35  ;;  %s621_s26 = sshll.u32 %s740_s25, 4  ;;  %s622_s26 = int_to_ptr.vmem [resolvable:$true] %s621_s26 }
  0x19   :  { %v64_v12 = vadd.f32 %v63_v7, %v62_v6  ;;  %v70_v13 = vrot.slane %v69_v11, 4  ;;  %v83_v63 = vand.u32 15, %v785_v35  ;;  %vm175_vm4 = vcmp.lt.s32.totalorder %v785_v35, 1  ;;  %s705_s27 = scalar_lea.vmem %s622_s26, 128  ;;  %p710_p9 = scmp.lt.s32.totalorder %s622_s26, %s622_s26 }
  0x1a   :  { %v51_v14 = vrot.slane %v50_v9, 2  ;;  %v57_v15 = vadd.f32 %v56_v10, %v55_v8  ;;  %v90_v0 = vand.u32 15, %v78_v60  ;;  %vm168_vm5 = vcmp.lt.s32.totalorder %v785_v35, 113  ;;  %p706_p8 = scmp.ne.s32.totalorder %s622_s26, %s705_s27  ;;  %p711_p10 = scmp.lt.s32.totalorder %s705_s27, %s705_s27 }
  0x1b   :  { %v65_v16 = vrot.slane %v64_v12, 2  ;;  %v71_v17 = vadd.f32 %v70_v13, %v69_v11  ;;  %vm815_vm6 = vcmp.eq.s32.totalorder %v83_v63, 0  ;;  %vm184_vm8 = vcmp.lt.s32.totalorder %v785_v35, 15 }
  0x1c   :  { %v52_v18 = vadd.f32 %v51_v14, %v50_v9  ;;  %v58_v19 = vrot.slane %v57_v15, 2  ;;  %vm819_vm7 = vcmp.eq.s32.totalorder %v90_v0, 0  ;;  %vm191_vm9 = vcmp.lt.s32.totalorder %v785_v35, 127  ;;  %p712_p11 = por %p711_p10, %p710_p9 }
  0x1d   :  { %v66_v20 = vadd.f32 %v65_v16, %v64_v12  ;;  %v72_v21 = vrot.slane %v71_v17, 2  ;;  %vm839_vm10 = vcmp.eq.s32.totalorder %v83_v63, 15  ;;  %vm843_vm11 = vcmp.eq.s32.totalorder %v90_v0, 15 }
  0x1e   :  { %v53_v22 = vrot.slane %v52_v18, 1  ;;  %v59_v23 = vadd.f32 %v58_v19, %v57_v15  ;;  %p713_p12 = pnand %p712_p11, %p706_p8 }
  0x1f   :  { %v67_v24 = vrot.slane %v66_v20, 1  ;;  %v73_v25 = vadd.f32 %v72_v21, %v71_v17 }
  0x20   :  { %v766_v26 = vadd.f32 %v53_v22, %v52_v18  ;;  %v60_v27 = vrot.slane %v59_v23, 1 }
  0x21   :  { %v768_v28 = vadd.f32 %v67_v24, %v66_v20  ;;  %v74_v29 = vrot.slane %v73_v25, 1 }
  0x22   :  { %v770_v30 = vadd.f32 %v60_v27, %v59_v23  ;;  %v220_v22 = vmul.f32 9.0, %v766_v26 }
  0x23   :  { %v112_v31 = vsel %vm111_vm1, %v768_v28, %v766_v26  ;;  %v775_v32 = vadd.f32 %v74_v29, %v73_v25  ;;  %v222_v15 = vmul.f32 9.0, %v768_v28 }
  0x24   :  { %123 = vrot.lane.b32.xlu1 %v112_v31, %s734_s0  ;;  %116 = vrot.lane.b32.xlu0 %v112_v31, %s735_s20  ;;  %v221_v23 = vmul.f32 9.0, %v770_v30 }
  0x25   :  { %v113_v33 = vsel %vm111_vm1, %v775_v32, %v770_v30  ;;  %v223_v16 = vmul.f32 9.0, %v775_v32 }
  0x28   :  { %125 = vrot.lane.b32.xlu1 %v113_v33, %s734_s0  ;;  %118 = vrot.lane.b32.xlu0 %v113_v33, %s735_s20 }
  0x96   :  { %v124_v36 = vpop.permute.xlu1 %123  ;;  %v117_v37 = vpop.permute.xlu0 %116 }
  0x9a   :  { %v126_v38 = vpop.permute.xlu1 %125  ;;  %v119_v39 = vpop.permute.xlu0 %118 }
  0x9b   :  { %v128_v40 = vsel %vm127_vm2, %v124_v36, %v126_v38  ;;  %v129_v41 = vsel %vm127_vm2, %v126_v38, %v124_v36  ;;  %v121_v42 = vsel %vm120_vm3, %v117_v37, %v119_v39  ;;  %v122_v43 = vsel %vm120_vm3, %v119_v39, %v117_v37 }
  0x9c   :  { %v132_v44 = vrot.slane %v122_v43, 1  ;;  %v133_v45 = vrot.slane %v121_v42, 1  ;;  %v144_v46 = vrot.slane %v128_v40, 1  ;;  %v145_v47 = vrot.slane %v129_v41, 1 }
  0x9d   :  { %v138_v48 = vadd.f32 %v122_v43, %v766_v26  ;;  %v139_v49 = vadd.f32 %v121_v42, %v770_v30 }
  0x9e   :  { %v140_v50 = vadd.f32 %v132_v44, %v768_v28  ;;  %v141_v51 = vadd.f32 %v133_v45, %v775_v32 }
  0x9f   :  { %v150_v54 = vadd.f32 %v138_v48, %v128_v40  ;;  %v151_v55 = vadd.f32 %v139_v49, %v129_v41 }
  0xa0   :  { %v152_v52 = vadd.f32 %v144_v46, %v140_v50  ;;  %v153_v53 = vadd.f32 %v145_v47, %v141_v51 }
  0xa2   :  { %v158_v56 = vrot.slane %v152_v52, 7  ;;  %v160_v57 = vrot.slane %v153_v53, 7 }
  0xa4   :  { %v159_v58 = vsel %vm111_vm1, %v158_v56, %v150_v54  ;;  %v161_v59 = vsel %vm111_vm1, %v160_v57, %v151_v55 }
  0xa5   :  { %164 = vrot.lane.b32.xlu0 %v159_v58, %s736_s21  ;;  %166 = vrot.lane.b32.xlu1 %v161_v59, %s736_s21 }
  0xa9   :  { %171 = vrot.lane.b32.xlu0 %v159_v58, %s737_s22  ;;  %173 = vrot.lane.b32.xlu1 %v161_v59, %s737_s22 }
  0xad   :  { %180 = vrot.lane.b32.xlu0 %v159_v58, %s738_s23  ;;  %182 = vrot.lane.b32.xlu1 %v161_v59, %s738_s23 }
  0xb1   :  { %187 = vrot.lane.b32.xlu0 %v159_v58, %s739_s24  ;;  %189 = vrot.lane.b32.xlu1 %v161_v59, %s739_s24 }
 0x117   :  { %v165_v61 = vpop.permute.xlu0 %164  ;;  %v167_v62 = vpop.permute.xlu1 %166 }
 0x118   :  { %v169_v7 = vsel %vm168_vm5, %v165_v61, %v167_v62  ;;  %v170_v8 = vsel %vm168_vm5, %v167_v62, %v165_v61 }
 0x11b   :  { %v172_v1 = vpop.permute.xlu0 %171  ;;  %v174_v4 = vpop.permute.xlu1 %173 }
 0x11c   :  { %v176_v5 = vsel %vm175_vm4, %v172_v1, %v174_v4  ;;  %v177_v6 = vsel %vm175_vm4, %v174_v4, %v172_v1 }
 0x11d   :  { %v178_v9 = vsel %vm815_vm6, %v169_v7, %v177_v6  ;;  %v179_v10 = vsel %vm819_vm7, %v170_v8, %v176_v5 }
 0x11e   :  { %v198_v13 = vrot.slane %v178_v9, 1  ;;  %v199_v14 = vrot.slane %v179_v10, 1  ;;  %v204_v19 = vadd.f32 %v178_v9, %v150_v54  ;;  %v205_v20 = vadd.f32 %v179_v10, %v151_v55 }
 0x11f   :  { %v181_v11 = vpop.permute.xlu0 %180  ;;  %v183_v12 = vpop.permute.xlu1 %182 }
 0x120   :  { %v185_v25 = vsel %vm184_vm8, %v181_v11, %v183_v12  ;;  %v186_v27 = vsel %vm184_vm8, %v183_v12, %v181_v11  ;;  %v206_v31 = vadd.f32 %v198_v13, %v152_v52  ;;  %v207_v32 = vadd.f32 %v199_v14, %v153_v53 }
 0x123   :  { %v188_v21 = vpop.permute.xlu0 %187  ;;  %v190_v24 = vpop.permute.xlu1 %189 }
 0x124   :  { %v192_v28 = vsel %vm191_vm9, %v188_v21, %v190_v24  ;;  %v193_v29 = vsel %vm191_vm9, %v190_v24, %v188_v21 }
 0x125   :  { %v194_v26 = vsel %vm839_vm10, %v186_v27, %v192_v28  ;;  %v195_v30 = vsel %vm843_vm11, %v185_v25, %v193_v29 }
 0x126   :  { %v210_v33 = vrot.slane %v194_v26, 1  ;;  %v211_v36 = vrot.slane %v195_v30, 1  ;;  %v216_v37 = vadd.f32 %v204_v19, %v194_v26  ;;  %v217_v38 = vadd.f32 %v205_v20, %v195_v30 }
 0x128   :  { %v218_v39 = vadd.f32 %v210_v33, %v206_v31  ;;  %v219_v40 = vadd.f32 %v211_v36, %v207_v32  ;;  %v224_v41 = vadd.f32 %v220_v22, %v216_v37  ;;  %v225_v42 = vadd.f32 %v221_v23, %v217_v38 }
 0x12a   :  { %v226_v43 = vadd.f32 %v222_v15, %v218_v39  ;;  %v227_v44 = vadd.f32 %v223_v16, %v219_v40  ;;  %v229_v45 = vsub.f32 1.5, %v225_v42  ;;  %v636_v46 = vadd.f32 -6.5, %v225_v42 }
 0x12b   :  { %v640_v47 = vadd.f32 -11.5, %v225_v42  ;;  %v644_v48 = vadd.f32 -14.5, %v225_v42  ;;  %v228_v49 = vsub.f32 1.5, %v224_v41  ;;  %v635_v50 = vadd.f32 -6.5, %v224_v41 }
 0x12c   :  { %v231_v51 = vsub.f32 1.5, %v227_v44  ;;  %v638_v52 = vadd.f32 -6.5, %v227_v44  ;;  %v237_v53 = vmul.f32 %v636_v46, %v229_v45  ;;  %v642_v54 = vadd.f32 -11.5, %v227_v44 }
 0x12d   :  { %v646_v55 = vadd.f32 -14.5, %v227_v44  ;;  %v249_v56 = vmul.f32 %v644_v48, %v640_v47  ;;  %v230_v57 = vsub.f32 1.5, %v226_v43  ;;  %v637_v58 = vadd.f32 -6.5, %v226_v43 }
 0x12e   :  { %v239_v59 = vmul.f32 %v638_v52, %v231_v51  ;;  %v639_v60 = vadd.f32 -11.5, %v224_v41  ;;  %v641_v61 = vadd.f32 -11.5, %v226_v43  ;;  %v236_v0 = vmul.f32 %v635_v50, %v228_v49 }
 0x12f   :  { %v251_v62 = vmul.f32 %v646_v55, %v642_v54  ;;  %v253_v63 = vmul.f32 %v249_v56, %v237_v53  ;;  %v643_v1 = vadd.f32 -14.5, %v224_v41  ;;  %v238_v4 = vmul.f32 %v637_v58, %v230_v57 }
 0x130   :  { %v645_v5 = vadd.f32 -14.5, %v226_v43 }
 0x131   :  { %v255_v6 = vmul.f32 %v251_v62, %v239_v59  ;;  %v248_v7 = vmul.f32 %v643_v1, %v639_v60  ;;  %v257_v9 = vmax.f32 %v253_v63, 0.0 }
 0x132   :  { %v250_v8 = vmul.f32 %v645_v5, %v641_v61 }
 0x133   :  { %v259_v10 = vmax.f32 %v255_v6, 0.0  ;;  %v252_v11 = vmul.f32 %v248_v7, %v236_v0  ;;  %v863_v16 = vmin.f32 %v257_v9, 1.0 }
 0x134   :  { %v254_v12 = vmul.f32 %v250_v8, %v238_v4 }
 0x135   :  { %v861_v13 = vmin.f32 %v259_v10, 1.0  ;;  %v256_v14 = vmax.f32 %v252_v11, 0.0 }
 0x136   :  { %v258_v15 = vmax.f32 %v254_v12, 0.0 }
 0x137   :  { %v270_v19 = vrot.slane %v861_v13, 7  ;;  %v871_v22 = vmin.f32 %v256_v14, 1.0 }
 0x138   :  { %v866_v20 = vmin.f32 %v258_v15, 1.0 }
 0x139   :  { %v271_v21 = vsel %vm111_vm1, %v270_v19, %v863_v16 }
 0x13a   :  { %276 = vrot.lane.b32.xlu1 %v271_v21, %s735_s20  ;;  %v268_v23 = vrot.slane %v866_v20, 7 }
 0x13c   :  { %v269_v24 = vsel %vm111_vm1, %v268_v23, %v871_v22 }
 0x13d   :  { %274 = vrot.lane.b32.xlu0 %v269_v24, %s735_s20 }
 0x13e   :  { %282 = vrot.lane.b32.xlu1 %v271_v21, %s734_s0 }
 0x141   :  { %280 = vrot.lane.b32.xlu0 %v269_v24, %s734_s0 }
 0x1ac   :  { %v277_v25 = vpop.permute.xlu1 %276 }
 0x1af   :  { %v275_v27 = vpop.permute.xlu0 %274 }
 0x1b0   :  { %v278_v28 = vsel %vm120_vm3, %v275_v27, %v277_v25  ;;  %v279_v29 = vsel %vm120_vm3, %v277_v25, %v275_v27  ;;  %v283_v26 = vpop.permute.xlu1 %282  ;;  %v376_v25 = vmul.f32 18.0, %v871_v22  ;;  %v377_v27 = vmul.f32 18.0, %v863_v16 }
 0x1b1   :  { %v288_v31 = vrot.slane %v279_v29, 1  ;;  %v289_v32 = vrot.slane %v278_v28, 1  ;;  %v294_v41 = vadd.f32 %v279_v29, %v871_v22  ;;  %v295_v42 = vadd.f32 %v278_v28, %v863_v16 }
 0x1b3   :  { %v281_v30 = vpop.permute.xlu0 %280  ;;  %v296_v37 = vadd.f32 %v288_v31, %v866_v20  ;;  %v297_v38 = vadd.f32 %v289_v32, %v861_v13 }
 0x1b4   :  { %v284_v33 = vsel %vm127_vm2, %v281_v30, %v283_v26  ;;  %v285_v36 = vsel %vm127_vm2, %v283_v26, %v281_v30  ;;  %v378_v26 = vmul.f32 18.0, %v866_v20  ;;  %v379_v30 = vmul.f32 18.0, %v861_v13 }
 0x1b5   :  { %v300_v39 = vrot.slane %v284_v33, 1  ;;  %v301_v40 = vrot.slane %v285_v36, 1  ;;  %v306_v45 = vadd.f32 %v294_v41, %v284_v33  ;;  %v307_v46 = vadd.f32 %v295_v42, %v285_v36 }
 0x1b7   :  { %v308_v43 = vadd.f32 %v300_v39, %v296_v37  ;;  %v309_v44 = vadd.f32 %v301_v40, %v297_v38 }
 0x1b9   :  { %v314_v47 = vrot.slane %v308_v43, 7  ;;  %v316_v48 = vrot.slane %v309_v44, 7 }
 0x1bb   :  { %v317_v49 = vsel %vm111_vm1, %v316_v48, %v307_v46  ;;  %v315_v50 = vsel %vm111_vm1, %v314_v47, %v306_v45 }
 0x1bc   :  { %322 = vrot.lane.b32.xlu1 %v317_v49, %s736_s21  ;;  %320 = vrot.lane.b32.xlu0 %v315_v50, %s736_s21 }
 0x1c0   :  { %328 = vrot.lane.b32.xlu1 %v317_v49, %s737_s22  ;;  %326 = vrot.lane.b32.xlu0 %v315_v50, %s737_s22 }
 0x1c4   :  { %336 = vrot.lane.b32.xlu1 %v317_v49, %s738_s23  ;;  %334 = vrot.lane.b32.xlu0 %v315_v50, %s738_s23 }
 0x1c8   :  { %342 = vrot.lane.b32.xlu1 %v317_v49, %s739_s24  ;;  %340 = vrot.lane.b32.xlu0 %v315_v50, %s739_s24 }
 0x22e   :  { %v323_v51 = vpop.permute.xlu1 %322  ;;  %v321_v52 = vpop.permute.xlu0 %320 }
 0x22f   :  { %v324_v57 = vsel %vm168_vm5, %v321_v52, %v323_v51  ;;  %v325_v58 = vsel %vm168_vm5, %v323_v51, %v321_v52 }
 0x232   :  { %v329_v53 = vpop.permute.xlu1 %328  ;;  %v327_v54 = vpop.permute.xlu0 %326 }
 0x233   :  { %v330_v55 = vsel %vm175_vm4, %v327_v54, %v329_v53  ;;  %v331_v56 = vsel %vm175_vm4, %v329_v53, %v327_v54 }
 0x234   :  { %v332_v59 = vsel %vm815_vm6, %v324_v57, %v331_v56  ;;  %v333_v60 = vsel %vm819_vm7, %v325_v58, %v330_v55 }
 0x235   :  { %v350_v63 = vrot.slane %v332_v59, 1  ;;  %v351_v0 = vrot.slane %v333_v60, 1  ;;  %v356_v1 = vadd.f32 %v332_v59, %v306_v45  ;;  %v357_v4 = vadd.f32 %v333_v60, %v307_v46 }
 0x236   :  { %v337_v61 = vpop.permute.xlu1 %336  ;;  %v335_v62 = vpop.permute.xlu0 %334 }
 0x237   :  { %v338_v7 = vsel %vm184_vm8, %v335_v62, %v337_v61  ;;  %v339_v8 = vsel %vm184_vm8, %v337_v61, %v335_v62  ;;  %v358_v11 = vadd.f32 %v350_v63, %v308_v43  ;;  %v359_v12 = vadd.f32 %v351_v0, %v309_v44 }
 0x23a   :  { %v343_v5 = vpop.permute.xlu1 %342  ;;  %v341_v6 = vpop.permute.xlu0 %340 }
 0x23b   :  { %v344_v9 = vsel %vm191_vm9, %v341_v6, %v343_v5  ;;  %v345_v10 = vsel %vm191_vm9, %v343_v5, %v341_v6 }
 0x23c   :  { %v346_v14 = vsel %vm839_vm10, %v339_v8, %v344_v9  ;;  %v347_v15 = vsel %vm843_vm11, %v338_v7, %v345_v10 }
 0x23d   :  { %v362_v19 = vrot.slane %v346_v14, 1  ;;  %v363_v21 = vrot.slane %v347_v15, 1  ;;  %v368_v23 = vadd.f32 %v356_v1, %v346_v14  ;;  %v369_v24 = vadd.f32 %v357_v4, %v347_v15 }
 0x23f   :  { %v370_v28 = vadd.f32 %v362_v19, %v358_v11  ;;  %v371_v29 = vadd.f32 %v363_v21, %v359_v12  ;;  %v372_v31 = vmul.f32 2.0, %v368_v23  ;;  %v373_v32 = vmul.f32 2.0, %v369_v24 }
 0x241   :  { %v374_v33 = vmul.f32 2.0, %v370_v28  ;;  %v375_v36 = vmul.f32 2.0, %v371_v29  ;;  %v380_v37 = vadd.f32 %v376_v25, %v372_v31  ;;  %v381_v38 = vadd.f32 %v377_v27, %v373_v32 }
 0x243   :  { %v382_v39 = vadd.f32 %v378_v26, %v374_v33  ;;  %v383_v40 = vadd.f32 %v379_v30, %v375_v36  ;;  %v385_v41 = vsub.f32 1.5, %v381_v38  ;;  %v648_v42 = vadd.f32 -6.5, %v381_v38 }
 0x244   :  { %v652_v43 = vadd.f32 -11.5, %v381_v38  ;;  %v656_v22 = vadd.f32 -14.5, %v381_v38  ;;  %v384_v44 = vsub.f32 1.5, %v380_v37  ;;  %v647_v16 = vadd.f32 -6.5, %v380_v37 }
 0x245   :  { %v387_v45 = vsub.f32 1.5, %v383_v40  ;;  %v650_v46 = vadd.f32 -6.5, %v383_v40  ;;  %v393_v47 = vmul.f32 %v648_v42, %v385_v41  ;;  %v654_v48 = vadd.f32 -11.5, %v383_v40 }
 0x246   :  { %v658_v49 = vadd.f32 -14.5, %v383_v40  ;;  %v405_v20 = vmul.f32 %v656_v22, %v652_v43  ;;  %v386_v50 = vsub.f32 1.5, %v382_v39  ;;  %v649_v13 = vadd.f32 -6.5, %v382_v39 }
 0x247   :  { %v395_v51 = vmul.f32 %v650_v46, %v387_v45  ;;  %v651_v52 = vadd.f32 -11.5, %v380_v37  ;;  %v653_v53 = vadd.f32 -11.5, %v382_v39  ;;  %v392_v56 = vmul.f32 %v647_v16, %v384_v44 }
 0x248   :  { %v407_v54 = vmul.f32 %v658_v49, %v654_v48  ;;  %v409_v55 = vmul.f32 %v405_v20, %v393_v47  ;;  %v655_v57 = vadd.f32 -14.5, %v380_v37  ;;  %v394_v58 = vmul.f32 %v649_v13, %v386_v50 }
 0x249   :  { %v657_v59 = vadd.f32 -14.5, %v382_v39 }
 0x24a   :  { %v411_v60 = vmul.f32 %v407_v54, %v395_v51  ;;  %v404_v61 = vmul.f32 %v655_v57, %v651_v52  ;;  %v413_v63 = vmax.f32 %v409_v55, 0.0 }
 0x24b   :  { %v406_v62 = vmul.f32 %v657_v59, %v653_v53 }
 0x24c   :  { %v415_v0 = vmax.f32 %v411_v60, 0.0  ;;  %v408_v1 = vmul.f32 %v404_v61, %v392_v56  ;;  %v931_v8 = vmin.f32 %v413_v63, 1.0 }
 0x24d   :  { %v410_v4 = vmul.f32 %v406_v62, %v394_v58 }
 0x24e   :  { %v929_v5 = vmin.f32 %v415_v0, 1.0  ;;  %v412_v6 = vmax.f32 %v408_v1, 0.0 }
 0x24f   :  { %v414_v7 = vmax.f32 %v410_v4, 0.0 }
 0x250   :  { %v426_v9 = vrot.slane %v929_v5, 7  ;;  %v939_v12 = vmin.f32 %v412_v6, 1.0  ;;  %v535_v17 = vmul.f32 18.0, %v929_v5 }
 0x251   :  { %v934_v10 = vmin.f32 %v414_v7, 1.0 }
 0x252   :  { %v427_v11 = vsel %vm111_vm1, %v426_v9, %v931_v8 }
 0x253   :  { %432 = vrot.lane.b32.xlu1 %v427_v11, %s735_s20  ;;  %v424_v14 = vrot.slane %v934_v10, 7 }
 0x255   :  { %v425_v15 = vsel %vm111_vm1, %v424_v14, %v939_v12  ;;  %v532_v14 = vmul.f32 18.0, %v939_v12 }
 0x256   :  { %430 = vrot.lane.b32.xlu0 %v425_v15, %s735_s20 }
 0x257   :  { %438 = vrot.lane.b32.xlu1 %v427_v11, %s734_s0 }
 0x25a   :  { %436 = vrot.lane.b32.xlu0 %v425_v15, %s734_s0  ;;  %v533_v15 = vmul.f32 18.0, %v931_v8 }
 0x2c5   :  { %v433_v19 = vpop.permute.xlu1 %432 }
 0x2c8   :  { %v431_v21 = vpop.permute.xlu0 %430 }
 0x2c9   :  { %v434_v23 = vsel %vm120_vm3, %v431_v21, %v433_v19  ;;  %v435_v24 = vsel %vm120_vm3, %v433_v19, %v431_v21  ;;  %v439_v28 = vpop.permute.xlu1 %438 }
 0x2ca   :  { %v444_v25 = vrot.slane %v435_v24, 1  ;;  %v445_v27 = vrot.slane %v434_v23, 1  ;;  %v450_v37 = vadd.f32 %v435_v24, %v939_v12  ;;  %v451_v38 = vadd.f32 %v434_v23, %v931_v8 }
 0x2cb   :  { %v534_v24 = vmul.f32 18.0, %v934_v10 }
 0x2cc   :  { %v437_v29 = vpop.permute.xlu0 %436  ;;  %v452_v26 = vadd.f32 %v444_v25, %v934_v10  ;;  %v453_v30 = vadd.f32 %v445_v27, %v929_v5 }
 0x2cd   :  { %v440_v31 = vsel %vm127_vm2, %v437_v29, %v439_v28  ;;  %v441_v32 = vsel %vm127_vm2, %v439_v28, %v437_v29 }
 0x2ce   :  { %v456_v33 = vrot.slane %v440_v31, 1  ;;  %v457_v36 = vrot.slane %v441_v32, 1  ;;  %v462_v41 = vadd.f32 %v450_v37, %v440_v31  ;;  %v463_v42 = vadd.f32 %v451_v38, %v441_v32 }
 0x2d0   :  { %v464_v39 = vadd.f32 %v456_v33, %v452_v26  ;;  %v465_v40 = vadd.f32 %v457_v36, %v453_v30 }
 0x2d2   :  { %v470_v43 = vrot.slane %v464_v39, 7  ;;  %v472_v22 = vrot.slane %v465_v40, 7 }
 0x2d4   :  { %v473_v44 = vsel %vm111_vm1, %v472_v22, %v463_v42  ;;  %v471_v16 = vsel %vm111_vm1, %v470_v43, %v462_v41 }
 0x2d5   :  { %478 = vrot.lane.b32.xlu1 %v473_v44, %s736_s21  ;;  %476 = vrot.lane.b32.xlu0 %v471_v16, %s736_s21 }
 0x2d9   :  { %484 = vrot.lane.b32.xlu1 %v473_v44, %s737_s22  ;;  %482 = vrot.lane.b32.xlu0 %v471_v16, %s737_s22 }
 0x2dd   :  { %492 = vrot.lane.b32.xlu1 %v473_v44, %s738_s23  ;;  %490 = vrot.lane.b32.xlu0 %v471_v16, %s738_s23 }
 0x2e1   :  { %498 = vrot.lane.b32.xlu1 %v473_v44, %s739_s24  ;;  %496 = vrot.lane.b32.xlu0 %v471_v16, %s739_s24 }
 0x347   :  { %v479_v45 = vpop.permute.xlu1 %478  ;;  %v477_v46 = vpop.permute.xlu0 %476 }
 0x348   :  { %v480_v50 = vsel %vm168_vm5, %v477_v46, %v479_v45  ;;  %v481_v13 = vsel %vm168_vm5, %v479_v45, %v477_v46 }
 0x34b   :  { %v485_v47 = vpop.permute.xlu1 %484  ;;  %v483_v48 = vpop.permute.xlu0 %482 }
 0x34c   :  { %v486_v49 = vsel %vm175_vm4, %v483_v48, %v485_v47  ;;  %v487_v20 = vsel %vm175_vm4, %v485_v47, %v483_v48  ;;  %v577_v48 = vshrl.u32 %v76_v34, 7 }
 0x34d   :  { %v488_v51 = vsel %vm815_vm6, %v480_v50, %v487_v20  ;;  %v489_v52 = vsel %vm819_vm7, %v481_v13, %v486_v49 }
 0x34e   :  { %v506_v55 = vrot.slane %v488_v51, 1  ;;  %v507_v56 = vrot.slane %v489_v52, 1  ;;  %v512_v57 = vadd.f32 %v488_v51, %v462_v41  ;;  %v513_v58 = vadd.f32 %v489_v52, %v463_v42 }
 0x34f   :  { %v493_v53 = vpop.permute.xlu1 %492  ;;  %v491_v54 = vpop.permute.xlu0 %490 }
 0x350   :  { %v494_v61 = vsel %vm184_vm8, %v491_v54, %v493_v53  ;;  %v495_v62 = vsel %vm184_vm8, %v493_v53, %v491_v54  ;;  %v514_v63 = vadd.f32 %v506_v55, %v464_v39  ;;  %v515_v0 = vadd.f32 %v507_v56, %v465_v40 }
 0x351   :  { %v578_v55 = vsub.s32 0, %v577_v48 }
 0x353   :  { %v499_v59 = vpop.permute.xlu1 %498  ;;  %v497_v60 = vpop.permute.xlu0 %496 }
 0x354   :  { %v500_v2 = vsel %vm191_vm9, %v497_v60, %v499_v59  ;;  %v501_v3 = vsel %vm191_vm9, %v499_v59, %v497_v60 }
 0x355   :  { %v502_v1 = vsel %vm839_vm10, %v495_v62, %v500_v2  ;;  %v503_v4 = vsel %vm843_vm11, %v494_v61, %v501_v3 }
 0x356   :  { %v518_v6 = vrot.slane %v502_v1, 1  ;;  %v519_v7 = vrot.slane %v503_v4, 1  ;;  %v524_v9 = vadd.f32 %v512_v57, %v502_v1  ;;  %v525_v11 = vadd.f32 %v513_v58, %v503_v4 }
 0x358   :  { %v526_v19 = vadd.f32 %v518_v6, %v514_v63  ;;  %v527_v21 = vadd.f32 %v519_v7, %v515_v0  ;;  %v528_v35 = vmul.f32 2.0, %v524_v9  ;;  %v529_v23 = vmul.f32 2.0, %v525_v11 }
 0x35a   :  { %v530_v25 = vmul.f32 2.0, %v526_v19  ;;  %v531_v27 = vmul.f32 2.0, %v527_v21  ;;  %v536_v18 = vadd.f32 %v532_v14, %v528_v35  ;;  %v537_v28 = vadd.f32 %v533_v15, %v529_v23 }
 0x35c   :  { %v538_v29 = vadd.f32 %v534_v24, %v530_v25  ;;  %v539_v31 = vadd.f32 %v535_v17, %v531_v27  ;;  %v540_v32 = vsub.f32 1.5, %v536_v18  ;;  %v541_v26 = vsub.f32 1.5, %v537_v28 }
 0x35d   :  { %v659_v30 = vadd.f32 -6.5, %v536_v18  ;;  %v660_v12 = vadd.f32 -6.5, %v537_v28  ;;  %v663_v33 = vadd.f32 -11.5, %v536_v18  ;;  %v664_v8 = vadd.f32 -11.5, %v537_v28 }
 0x35e   :  { %v542_v36 = vsub.f32 1.5, %v538_v29  ;;  %v543_v37 = vsub.f32 1.5, %v539_v31  ;;  %v661_v38 = vadd.f32 -6.5, %v538_v29  ;;  %v662_v39 = vadd.f32 -6.5, %v539_v31 }
 0x35f   :  { %v665_v40 = vadd.f32 -11.5, %v538_v29  ;;  %v666_v10 = vadd.f32 -11.5, %v539_v31  ;;  %v548_v41 = vmul.f32 %v659_v30, %v540_v32  ;;  %v549_v5 = vmul.f32 %v660_v12, %v541_v26 }
 0x360   :  { %v667_v42 = vadd.f32 -14.5, %v536_v18  ;;  %v668_v43 = vadd.f32 -14.5, %v537_v28  ;;  %v550_v22 = vmul.f32 %v661_v38, %v542_v36  ;;  %v551_v44 = vmul.f32 %v662_v39, %v543_v37 }
 0x361   :  { %v669_v16 = vadd.f32 -14.5, %v538_v29  ;;  %v670_v45 = vadd.f32 -14.5, %v539_v31 }
 0x362   :  { %v560_v46 = vmul.f32 %v667_v42, %v663_v33  ;;  %v561_v47 = vmul.f32 %v668_v43, %v664_v8 }
 0x363   :  { %v562_v49 = vmul.f32 %v669_v16, %v665_v40  ;;  %v563_v20 = vmul.f32 %v670_v45, %v666_v10 }
 0x364   :  { %v564_v50 = vmul.f32 %v560_v46, %v548_v41  ;;  %v565_v13 = vmul.f32 %v561_v47, %v549_v5 }
 0x365   :  { %v566_v51 = vmul.f32 %v562_v49, %v550_v22  ;;  %v567_v52 = vmul.f32 %v563_v20, %v551_v44 }
 0x366   :  { %v568_v53 = vmax.f32 %v564_v50, 0.0  ;;  %v569_v54 = vmax.f32 %v565_v13, 0.0 }
 0x367   :  { %v570_v56 = vmax.f32 %v566_v51, 0.0  ;;  %v571_v57 = vmax.f32 %v567_v52, 0.0 }
 0x368   :  { %v572_v58 = vmin.f32 %v568_v53, 1.0  ;;  %v573_v59 = vmin.f32 %v569_v54, 1.0 }
 0x369   :  { %v574_v60 = vmin.f32 %v570_v56, 1.0  ;;  %v575_v61 = vmin.f32 %v571_v57, 1.0 }
 0x36a   :  { %v579_v62 = vrot.slane %v572_v58, %v578_v55  ;;  %v583_v2 = vrot.slane %v573_v59, %v578_v55 }
 0x36b   :  { %v587_v34 = vrot.slane %v574_v60, %v578_v55  ;;  %v591_v3 = vrot.slane %v575_v61, %v578_v55 }
 0x36c   :  { %v596_v63 = vcombine.low %v579_v62, %v583_v2 }
 0x36d   :  { %v604_v0 = vcombine.low %v587_v34, %v591_v3 }
 0x36e   :  { %671 = vst.sshfl [vmem:[#allocation5] sm:$0x33 pattern:$0x76325410] %v596_v63 }
 0x36f   :  { %672 = vst.sshfl [vmem:[#allocation5 + $0x4] sm:$0x33 pattern:$0x76325410] %v604_v0 }
 0x370   :  { %716 = shalt.err (!%p713_p12)
}
 0x371   :  { %s717_s30 = scalar_lea.hbm %s1014_s1, 128 }
 0x372   :  { %p718_p13 = scmp.ne.s32.totalorder %s1014_s1, %s717_s30  ;;  %p721_p0 = scmp.lt.u32.totalorder %s717_s30, %s1014_s1 }
 0x374   :  { %p723_p1 = pnand %p721_p0, %p718_p13 }
 0x376   :  { %726 = shalt.err (!%p723_p1)
}
 0x377   :  { %627 = dma.vmem_to_hbm [thread:$0]  %s622_s26, 128, %s1014_s1, [#allocation4], %s732_s16, %s732_s16, %s733_s17  }
 0x378   :  { %729 = dma.done.wait [#allocation4], 128  }
 0x379   :  { %730 = vsyncadd [#allocation4], 4294967168 }
 0x37a   :  { %631 = vsyncpa [#allocation3], 1 }
 0x37b   :  { %632 = vsyncpa [#allocation4], 1 }

</bundles_post_ra>
